<compile_context>
chip_gen: v5e
topology: v5e:2x2
jax: 0.10.0
libtpu: 0.0.40
codegen_flags: <defaults>
</compile_context>

<pallas_src>
import functools

import jax
import jax.numpy as jnp
from jax.experimental import pallas as pl
from jax.experimental.pallas import tpu as pltpu

LANE = 128


def _round_up(x, m):
    return (x + m - 1) // m * m


# ----------------------------------------------------------------------------
# One SAGEConv layer:  out = (A @ X) @ Wl + X @ Wr + b   (optionally ReLU'd)
# ----------------------------------------------------------------------------
def _sage_layer_kernel(a_ref, xk_ref, xi_ref, wl_ref, wr_ref, b_ref, out_ref,
                       acc_ref, *, apply_relu):
    k = pl.program_id(1)

    @pl.when(k == 0)
    def _():
        acc_ref[...] = jnp.zeros_like(acc_ref)

    # Mean aggregation tile: acc[i] += A[i, k] @ X[k]   (bf16 operands, f32 acc)
    acc_ref[...] += jnp.dot(a_ref[...], xk_ref[...],
                            preferred_element_type=jnp.float32)

    @pl.when(k == pl.num_programs(1) - 1)
    def _():
        # Neighbor + self projections on the finished aggregation block.
        agg = acc_ref[...].astype(jnp.bfloat16)
        out = (jnp.dot(agg, wl_ref[...], preferred_element_type=jnp.float32)
               + jnp.dot(xi_ref[...], wr_ref[...],
                         preferred_element_type=jnp.float32)
               + b_ref[...])
        if apply_relu:
            out = jnp.maximum(out, 0.0)
        out_ref[...] = out.astype(out_ref.dtype)


def _sage_layer(a, x, wl, wr, bias, *, apply_relu, out_dtype, tm, tk):
    n_pad = a.shape[0]
    f_pad = x.shape[1]
    f_out = wl.shape[1]
    assert n_pad % tm == 0 and n_pad % tk == 0

    kernel = functools.partial(_sage_layer_kernel, apply_relu=apply_relu)
    return pl.pallas_call(
        kernel,
        out_shape=jax.ShapeDtypeStruct((n_pad, f_out), out_dtype),
        grid_spec=pltpu.PrefetchScalarGridSpec(
            num_scalar_prefetch=0,
            grid=(n_pad // tm, n_pad // tk),
            in_specs=[
                pl.BlockSpec((tm, tk), lambda i, k: (i, k)),        # A tile
                pl.BlockSpec((tk, f_pad), lambda i, k: (k, 0)),     # neighbor X
                pl.BlockSpec((tm, f_pad), lambda i, k: (i, 0)),     # self X
                pl.BlockSpec((f_pad, f_out), lambda i, k: (0, 0)),  # Wl (resident)
                pl.BlockSpec((f_pad, f_out), lambda i, k: (0, 0)),  # Wr (resident)
                pl.BlockSpec((1, f_out), lambda i, k: (0, 0)),      # bias
            ],
            out_specs=pl.BlockSpec((tm, f_out), lambda i, k: (i, 0)),
            scratch_shapes=[pltpu.VMEM((tm, f_pad), jnp.float32)],
        ),
        compiler_params=pltpu.CompilerParams(
            dimension_semantics=("parallel", "arbitrary"),
            vmem_limit_bytes=32 * 1024 * 1024,
        ),
    )(a, x, x, wl, wr, bias)


# ----------------------------------------------------------------------------
# Glue (plain JAX): edge_index -> row-normalized dense adjacency, padding.
# ----------------------------------------------------------------------------
def edge_index_to_mean_adj(edge_index, num_nodes):
    """A[i, j] = 1/deg_in(i) if edge j->i (duplicates counted), else 0."""
    src = edge_index[0]
    dst = edge_index[1]
    a = jnp.zeros((num_nodes, num_nodes), jnp.float32)
    a = a.at[dst, src].add(1.0)
    deg = jnp.sum(a, axis=1, keepdims=True)
    return a / jnp.maximum(deg, 1.0)


def gnn_encoder(x, edge_index, params, *, tm=256, tk=256):
    n, f_in = x.shape
    hidden = params["wl1"].shape[1]
    out_ch = params["wl2"].shape[1]

    assert tm % 8 == 0 and tk % LANE == 0
    assert max(tm, tk) % min(tm, tk) == 0
    n_pad = _round_up(n, max(tm, tk))
    fi_p = _round_up(f_in, LANE)
    hd_p = _round_up(hidden, LANE)
    oc_p = _round_up(out_ch, LANE)

    # Dense row-normalized mean adjacency in bf16 (the only O(N^2) operand).
    # TODO(synk): for large sparse graphs replace the dense A with a CSR gather
    # driven by PrefetchScalarGridSpec scalar-prefetched row pointers.
    a = edge_index_to_mean_adj(edge_index, n)
    a = jnp.pad(a, ((0, n_pad - n), (0, n_pad - n))).astype(jnp.bfloat16)

    xp = jnp.pad(x, ((0, n_pad - n), (0, fi_p - f_in))).astype(jnp.bfloat16)

    def pad_w(w, fi, fo):
        return jnp.pad(w, ((0, fi - w.shape[0]),
                           (0, fo - w.shape[1]))).astype(jnp.bfloat16)

    wl1 = pad_w(params["wl1"], fi_p, hd_p)
    wr1 = pad_w(params["wr1"], fi_p, hd_p)
    b1 = jnp.pad(params["b1"], ((0, 0), (0, hd_p - hidden))).astype(jnp.float32)
    wl2 = pad_w(params["wl2"], hd_p, oc_p)
    wr2 = pad_w(params["wr2"], hd_p, oc_p)
    b2 = jnp.pad(params["b2"], ((0, 0), (0, oc_p - out_ch))).astype(jnp.float32)

    # Layer 1 (ReLU, bf16 activations for the layer-2 A-matmul), layer 2 (f32 out).
    h1 = _sage_layer(a, xp, wl1, wr1, b1, apply_relu=True,
                     out_dtype=jnp.bfloat16, tm=tm, tk=tk)
    out = _sage_layer(a, h1, wl2, wr2, b2, apply_relu=False,
                      out_dtype=jnp.float32, tm=tm, tk=tk)
    return out[:n, :out_ch]


# ----------------------------------------------------------------------------
# Exact f32 reference (mirrors PyG SAGEConv mean aggregation).
# ----------------------------------------------------------------------------
def reference(x, edge_index, params):
    hi = jax.lax.Precision.HIGHEST
    a = edge_index_to_mean_adj(edge_index, x.shape[0])
    agg1 = jnp.dot(a, x, precision=hi)
    h1 = jnp.maximum(jnp.dot(agg1, params["wl1"], precision=hi)
                     + jnp.dot(x, params["wr1"], precision=hi)
                     + params["b1"], 0.0)
    agg2 = jnp.dot(a, h1, precision=hi)
    return (jnp.dot(agg2, params["wl2"], precision=hi)
            + jnp.dot(h1, params["wr2"], precision=hi)
            + params["b2"])


if __name__ == "__main__":
    key = jax.random.PRNGKey(0)
    k_x, k_e1, k_e2, k1, k2, k3, k4 = jax.random.split(key, 7)

    # Small deterministic example: 200 nodes, 16 input features, 600 edges,
    # hidden_channels=32, out_channels=16.
    num_nodes, f_in, hidden, out_ch, num_edges = 200, 16, 32, 16, 600

    x = jax.random.normal(k_x, (num_nodes, f_in), jnp.float32)
    edge_index = jnp.stack([
        jax.random.randint(k_e1, (num_edges,), 0, num_nodes),
        jax.random.randint(k_e2, (num_edges,), 0, num_nodes),
    ]).astype(jnp.int32)

    params = {
        "wl1": 0.1 * jax.random.normal(k1, (f_in, hidden), jnp.float32),
        "wr1": 0.1 * jax.random.normal(k2, (f_in, hidden), jnp.float32),
        "b1": jnp.zeros((1, hidden), jnp.float32) + 0.01,
        "wl2": 0.1 * jax.random.normal(k3, (hidden, out_ch), jnp.float32),
        "wr2": 0.1 * jax.random.normal(k4, (hidden, out_ch), jnp.float32),
        "b2": jnp.zeros((1, out_ch), jnp.float32) + 0.01,
    }

    ref = reference(x, edge_index, params)

    # Default tiles (grid collapses to 1x1 at this toy size).
    out = jax.block_until_ready(gnn_encoder(x, edge_index, params))
    # Smaller tiles to exercise a real 2x2 grid (multi-step k accumulation +
    # multiple row blocks) with the same numerics.
    out_tiled = jax.block_until_ready(
        gnn_encoder(x, edge_index, params, tm=128, tk=128))

    assert out.shape == (num_nodes, out_ch)
    # bf16 adjacency/activations with f32 accumulation: loosened tolerance.
    assert jnp.allclose(out, ref, atol=3e-2, rtol=3e-2), "mismatch vs reference"
    assert jnp.allclose(out_tiled, ref, atol=3e-2, rtol=3e-2), \
        "tiled-grid mismatch vs reference"
    assert jnp.allclose(out, out_tiled, atol=1e-3, rtol=1e-3), \
        "tile-size dependence"

    print("KERNEL_OK")
</pallas_src>

<mosaic_0001>
module attributes {stable_mosaic.version = 11 : i64} {
  func.func @_sage_layer_kernel(%arg0: i32, %arg1: i32, %arg2: memref<256x256xbf16, #tpu.memory_space<vmem>>, %arg3: memref<256x128xbf16, #tpu.memory_space<vmem>>, %arg4: memref<256x128xbf16, #tpu.memory_space<vmem>>, %arg5: memref<128x128xbf16, #tpu.memory_space<vmem>>, %arg6: memref<128x128xbf16, #tpu.memory_space<vmem>>, %arg7: memref<1x128xf32, #tpu.memory_space<vmem>>, %arg8: memref<256x128xbf16, #tpu.memory_space<vmem>>, %arg9: memref<256x128xf32, #tpu.memory_space<vmem>>) attributes {dimension_semantics = [#tpu.dimension_semantics<parallel>, #tpu.dimension_semantics<arbitrary>], iteration_bounds = array<i64: 1, 1>, scalar_prefetch = 0 : i64, scratch_operands = 1 : i64, tpu.core_type = #tpu.core_type<tc>, window_params = [{transform_indices = @transform_0, window_bounds = array<i64: 256, 256>}, {transform_indices = @transform_1, window_bounds = array<i64: 256, 128>}, {transform_indices = @transform_2, window_bounds = array<i64: 256, 128>}, {pipeline_mode = #tpu.pipeline_mode<synchronous>, transform_indices = @transform_3, window_bounds = array<i64: 128, 128>}, {pipeline_mode = #tpu.pipeline_mode<synchronous>, transform_indices = @transform_4, window_bounds = array<i64: 128, 128>}, {pipeline_mode = #tpu.pipeline_mode<synchronous>, transform_indices = @transform_5, window_bounds = array<i64: 1, 128>}, {transform_indices = @transform_6, window_bounds = array<i64: 256, 128>}]} {
    %c0_i32 = arith.constant 0 : i32
    %0 = arith.cmpi eq, %arg1, %c0_i32 : i32
    %1 = arith.extui %0 : i1 to i32
    %c0_i32_0 = arith.constant 0 : i32
    %2 = arith.cmpi ne, %1, %c0_i32_0 : i32
    scf.if %2 {
      %cst_10 = arith.constant 0.000000e+00 : f32
      %12 = vector.broadcast %cst_10 : f32 to vector<256x128xf32>
      %c0_11 = arith.constant 0 : index
      %c0_12 = arith.constant 0 : index
      %13 = vector.load %arg9[%c0_11, %c0_12] : memref<256x128xf32, #tpu.memory_space<vmem>>, vector<256x128xf32>
      tpu.vector_store %arg9[%c0_11, %c0_12], %12 {strides = array<i32>} : memref<256x128xf32, #tpu.memory_space<vmem>>, vector<256x128xf32>,
    } else {
    }
    %c0 = arith.constant 0 : index
    %c0_1 = arith.constant 0 : index
    %3 = vector.load %arg9[%c0, %c0_1] : memref<256x128xf32, #tpu.memory_space<vmem>>, vector<256x128xf32>
    %c0_2 = arith.constant 0 : index
    %c0_3 = arith.constant 0 : index
    %4 = vector.load %arg2[%c0_2, %c0_3] : memref<256x256xbf16, #tpu.memory_space<vmem>>, vector<256x256xbf16>
    %c0_4 = arith.constant 0 : index
    %c0_5 = arith.constant 0 : index
    %5 = vector.load %arg3[%c0_4, %c0_5] : memref<256x128xbf16, #tpu.memory_space<vmem>>, vector<256x128xbf16>
    %cst = arith.constant dense<0.000000e+00> : vector<256x128xf32>
    %6 = tpu.matmul %4, %5, %cst {dimension_numbers = #tpu.dot_dimension_numbers<[1], [0], [0], [1], [0, 0, 1, 1], [], []>} : vector<256x256xbf16>, vector<256x128xbf16>, vector<256x128xf32> -> vector<256x128xf32>
    %7 = arith.addf %3, %6 : vector<256x128xf32>
    %c0_6 = arith.constant 0 : index
    %c0_7 = arith.constant 0 : index
    %8 = vector.load %arg9[%c0_6, %c0_7] : memref<256x128xf32, #tpu.memory_space<vmem>>, vector<256x128xf32>
    tpu.vector_store %arg9[%c0_6, %c0_7], %7 {strides = array<i32>} : memref<256x128xf32, #tpu.memory_space<vmem>>, vector<256x128xf32>,
    %c0_i32_8 = arith.constant 0 : i32
    %9 = arith.cmpi eq, %arg1, %c0_i32_8 : i32
    %10 = arith.extui %9 : i1 to i32
    %c0_i32_9 = arith.constant 0 : i32
    %11 = arith.cmpi ne, %10, %c0_i32_9 : i32
    scf.if %11 {
      %c0_10 = arith.constant 0 : index
      %c0_11 = arith.constant 0 : index
      %12 = vector.load %arg9[%c0_10, %c0_11] : memref<256x128xf32, #tpu.memory_space<vmem>>, vector<256x128xf32>
      %13 = arith.truncf %12 : vector<256x128xf32> to vector<256x128xbf16>
      %c0_12 = arith.constant 0 : index
      %c0_13 = arith.constant 0 : index
      %14 = vector.load %arg5[%c0_12, %c0_13] : memref<128x128xbf16, #tpu.memory_space<vmem>>, vector<128x128xbf16>
      %cst_14 = arith.constant dense<0.000000e+00> : vector<256x128xf32>
      %15 = tpu.matmul %13, %14, %cst_14 {dimension_numbers = #tpu.dot_dimension_numbers<[1], [0], [0], [1], [0, 0, 1, 1], [], []>} : vector<256x128xbf16>, vector<128x128xbf16>, vector<256x128xf32> -> vector<256x128xf32>
      %c0_15 = arith.constant 0 : index
      %c0_16 = arith.constant 0 : index
      %16 = vector.load %arg4[%c0_15, %c0_16] : memref<256x128xbf16, #tpu.memory_space<vmem>>, vector<256x128xbf16>
      %c0_17 = arith.constant 0 : index
      %c0_18 = arith.constant 0 : index
      %17 = vector.load %arg6[%c0_17, %c0_18] : memref<128x128xbf16, #tpu.memory_space<vmem>>, vector<128x128xbf16>
      %cst_19 = arith.constant dense<0.000000e+00> : vector<256x128xf32>
      %18 = tpu.matmul %16, %17, %cst_19 {dimension_numbers = #tpu.dot_dimension_numbers<[1], [0], [0], [1], [0, 0, 1, 1], [], []>} : vector<256x128xbf16>, vector<128x128xbf16>, vector<256x128xf32> -> vector<256x128xf32>
      %19 = arith.addf %15, %18 : vector<256x128xf32>
      %c0_20 = arith.constant 0 : index
      %c0_21 = arith.constant 0 : index
      %20 = vector.load %arg7[%c0_20, %c0_21] : memref<1x128xf32, #tpu.memory_space<vmem>>, vector<1x128xf32>
      %21 = vector.broadcast %20 : vector<1x128xf32> to vector<256x128xf32>
      %22 = arith.addf %19, %21 : vector<256x128xf32>
      %cst_22 = arith.constant 0.000000e+00 : f32
      %23 = vector.broadcast %cst_22 : f32 to vector<256x128xf32>
      %24 = arith.maximumf %22, %23 : vector<256x128xf32>
      %25 = arith.truncf %24 : vector<256x128xf32> to vector<256x128xbf16>
      %c0_23 = arith.constant 0 : index
      %c0_24 = arith.constant 0 : index
      %26 = vector.load %arg8[%c0_23, %c0_24] : memref<256x128xbf16, #tpu.memory_space<vmem>>, vector<256x128xbf16>
      tpu.vector_store %arg8[%c0_23, %c0_24], %25 {strides = array<i32>} : memref<256x128xbf16, #tpu.memory_space<vmem>>, vector<256x128xbf16>,
    } else {
    }
    return
  }
  func.func @transform_0(%arg0: i32, %arg1: i32) -> (i32, i32) {
    %c0_i32 = arith.constant 0 : i32
    return %arg0, %arg1 : i32, i32
  }
  func.func @transform_1(%arg0: i32, %arg1: i32) -> (i32, i32) {
    %c0_i32 = arith.constant 0 : i32
    %c0_i32_0 = arith.constant 0 : i32
    return %arg1, %c0_i32 : i32, i32
  }
  func.func @transform_2(%arg0: i32, %arg1: i32) -> (i32, i32) {
    %c0_i32 = arith.constant 0 : i32
    %c0_i32_0 = arith.constant 0 : i32
    return %arg0, %c0_i32 : i32, i32
  }
  func.func @transform_3(%arg0: i32, %arg1: i32) -> (i32, i32) {
    %c0_i32 = arith.constant 0 : i32
    %c0_i32_0 = arith.constant 0 : i32
    %c0_i32_1 = arith.constant 0 : i32
    return %c0_i32, %c0_i32_0 : i32, i32
  }
  func.func @transform_4(%arg0: i32, %arg1: i32) -> (i32, i32) {
    %c0_i32 = arith.constant 0 : i32
    %c0_i32_0 = arith.constant 0 : i32
    %c0_i32_1 = arith.constant 0 : i32
    return %c0_i32, %c0_i32_0 : i32, i32
  }
  func.func @transform_5(%arg0: i32, %arg1: i32) -> (i32, i32) {
    %c0_i32 = arith.constant 0 : i32
    %c0_i32_0 = arith.constant 0 : i32
    %c0_i32_1 = arith.constant 0 : i32
    return %c0_i32, %c0_i32_0 : i32, i32
  }
  func.func @transform_6(%arg0: i32, %arg1: i32) -> (i32, i32) {
    %c0_i32 = arith.constant 0 : i32
    %c0_i32_0 = arith.constant 0 : i32
    return %arg0, %c0_i32 : i32, i32
  }
}

</mosaic_0001>

<bundles_post_ra>
// kernel: tpu_custom_call.1
= control target key start
LH: loop header
LB: loop body
LE: loop exit
PB: predicated region body
PF: predicated region fallthrough
CT: control target
= control target key end

     0   :  { %11 = vsyncpa [#allocation4], 0  ;;  %s2143_s0 = inlined_call_operand.hbm [shape: bf16[256,256], index: 0, kind: input, shape index: {}]   ;;  %s2144_s1 = inlined_call_operand.hbm [shape: bf16[256,128], index: 1, kind: input, shape index: {}]   ;;  %s2145_s2 = inlined_call_operand.hbm [shape: bf16[256,128], index: 2, kind: input, shape index: {}]   ;;  %s2146_s3 = inlined_call_operand.hbm [shape: bf16[128,128], index: 3, kind: input, shape index: {}]   ;;  %s2147_s4 = inlined_call_operand.hbm [shape: bf16[128,128], index: 4, kind: input, shape index: {}]   ;;  %s2148_s5 = inlined_call_operand.vmem [shape: f32[1,128], index: 5, kind: input, shape index: {}]   ;;  %s2149_s6 = inlined_call_operand.hbm [shape: bf16[256,128], index: 6, kind: output, shape index: {}]  }
   0x1   :  { %12 = vsyncpa [#allocation7], 0 }
   0x2   :  { %13 = vsyncpa [#allocation10], 0  ;;  %s32_s23 = sshll.u32 %s2144_s1, 4  ;;  %s33_s23 = int_to_ptr.hbm [resolvable:$true] %s32_s23 }
   0x3   :  { %14 = vsyncpa [#allocation5], 0  ;;  %s2028_s24 = smov [#allocation6]   ;;  %s58_s28 = sshll.u32 %s2146_s3, 4  ;;  %s59_s28 = int_to_ptr.hbm [resolvable:$true] %s58_s28 }
   0x4   :  { %s34_s25 = sshll.u32 %s2028_s24, 4  ;;  %s2029_s29 = smov 64   ;;  %s35_s25 = int_to_ptr.vmem [resolvable:$true] %s34_s25 }
   0x5   :  { %s2030_s30 = smov 4   ;;  %s2031_s7 = smov [#allocation9]  }
   0x6   :  { %40 = dma.hbm_to_vmem [thread:$0]  %s33_s23, 2048, %s35_s25, [#allocation7], %s2029_s29, %s2029_s29, %s2030_s30  }
   0x7   :  { %s60_s8 = sshll.u32 %s2031_s7, 4  ;;  %s19_s10 = sshll.u32 %s2143_s0, 4  ;;  %s61_s8 = int_to_ptr.vmem [resolvable:$true] %s60_s8  ;;  %s20_s10 = int_to_ptr.hbm [resolvable:$true] %s19_s10 }
   0x8   :  { %66 = dma.hbm_to_vmem [thread:$0]  %s59_s28, 1024, %s61_s8, [#allocation10], %s2029_s29, %s2029_s29, %s2030_s30  }
   0x9   :  { %s2032_s3 = smov [#allocation3]   ;;  %s45_s14 = sshll.u32 %s2145_s2, 4  ;;  %s46_s14 = int_to_ptr.hbm [resolvable:$true] %s45_s14 }
   0xa   :  { %s21_s11 = sshll.u32 %s2032_s3, 4  ;;  %s2033_s15 = smov 128   ;;  %s22_s11 = int_to_ptr.vmem [resolvable:$true] %s21_s11 }
   0xb   :  { %s2034_s16 = smov 8   ;;  %s2035_s17 = smov [#allocation8]  }
   0xc   :  { %27 = dma.hbm_to_vmem [thread:$0]  %s20_s10, 4096, %s22_s11, [#allocation4], %s2033_s15, %s2033_s15, %s2034_s16  }
   0xd   :  { %s47_s18 = sshll.u32 %s2035_s17, 4  ;;  %s71_s20 = sshll.u32 %s2147_s4, 4  ;;  %s48_s18 = int_to_ptr.vmem [resolvable:$true] %s47_s18  ;;  %s72_s20 = int_to_ptr.hbm [resolvable:$true] %s71_s20 }
   0xe   :  { %53 = dma.hbm_to_vmem [thread:$0]  %s46_s14, 2048, %s48_s18, [#allocation7], %s2029_s29, %s2029_s29, %s2030_s30  }
   0xf   :  { %s2036_s21 = smov [#allocation11]  }
  0x10   :  { %s73_s22 = sshll.u32 %s2036_s21, 4  ;;  %s74_s22 = int_to_ptr.vmem [resolvable:$true] %s73_s22 }
  0x11   :  { %79 = dma.hbm_to_vmem [thread:$0]  %s72_s20, 1024, %s74_s22, [#allocation10], %s2029_s29, %s2029_s29, %s2030_s30  }
  0x12   :  { %2020 = dma.done.wait [#allocation4], 4096  }
  0x13   :  { %2021 = vsyncadd [#allocation4], 4294963200 }
  0x14   :  { %2022 = dma.done.wait [#allocation7], 4096  }
  0x15   :  { %2023 = vsyncadd [#allocation7], 4294963200 }
  0x16   :  { %2024 = dma.done.wait [#allocation10], 2048  }
  0x17   :  { %2025 = vsyncadd [#allocation10], 4294965248  ;;  %v1729_v0 = vld [vmem:[#allocation6 + $0x38] sm:$0xff]  ;;  %v1728_v2 = vld [vmem:[#allocation6 + $0x30] sm:$0xff]  ;;  %s1355_s26 = sshll.u32 %s2149_s6, 4  ;;  %s1356_s26 = int_to_ptr.hbm [resolvable:$true] %s1355_s26 }
  0x18   :  { %v1737_v1 = vld [vmem:[#allocation6 + $0x78] sm:$0xff]  ;;  %490 = vmatpush.bf16.msra.mxu0 %v1729_v0  ;;  %v1736_v3 = vld [vmem:[#allocation6 + $0x70] sm:$0xff]  ;;  %v1727_v4 = vld [vmem:[#allocation6 + $0x28] sm:$0xff] }
  0x19   :  { %579 = vmatpush.bf16.msra.mxu1 %v1737_v1  ;;  %v1735_v5 = vld [vmem:[#allocation6 + $0x68] sm:$0xff]  ;;  %v1726_v6 = vld [vmem:[#allocation6 + $0x20] sm:$0xff]  ;;  %v1725_v8 = vld [vmem:[#allocation6 + $0x18] sm:$0xff] }
  0x1a   :  { %v1734_v7 = vld [vmem:[#allocation6 + $0x60] sm:$0xff]  ;;  %v1733_v9 = vld [vmem:[#allocation6 + $0x58] sm:$0xff]  ;;  %v1724_v10 = vld [vmem:[#allocation6 + $0x10] sm:$0xff] }
  0x1b   :  { %v1732_v11 = vld [vmem:[#allocation6 + $0x50] sm:$0xff]  ;;  %v1723_v12 = vld [vmem:[#allocation6 + $0x8] sm:$0xff]  ;;  %v1722_v14 = vld [vmem:[#allocation6] sm:$0xff] }
  0x1c   :  { %491 = vmatpush.bf16.msra.mxu0 %v1728_v2  ;;  %v1731_v13 = vld [vmem:[#allocation6 + $0x48] sm:$0xff]  ;;  %v1730_v15 = vld [vmem:[#allocation6 + $0x40] sm:$0xff]  ;;  %v1380_v22 = vld [vmem:[#allocation3 + $0x10] sm:$0xf] }
  0x1d   :  { %580 = vmatpush.bf16.msra.mxu1 %v1736_v3  ;;  %v1372_v16 = vld [vmem:[#allocation3] sm:$0xf]  ;;  %v1691_v17 = vld [vmem:[#allocation3 + $0x4] sm:$0xf0]  ;;  %v1690_v18 = vld [vmem:[#allocation3 + $0x4] sm:$0xf] }
  0x1e   :  { %v1374_v19 = vld [vmem:[#allocation3 + $0x8] sm:$0xf0]  ;;  %v1373_v20 = vor.u32 %v1691_v17, %v1372_v16  ;;  %v1693_v23 = vld [vmem:[#allocation3 + $0x14] sm:$0xf0]  ;;  %v1692_v24 = vld [vmem:[#allocation3 + $0x14] sm:$0xf] }
  0x1f   :  { %v1377_v21 = vor.u32 %v1690_v18, %v1374_v19  ;;  %v1382_v25 = vld [vmem:[#allocation3 + $0x18] sm:$0xf0]  ;;  %v1381_v26 = vor.u32 %v1693_v23, %v1380_v22  ;;  %v1388_v28 = vld [vmem:[#allocation3 + $0x20] sm:$0xf]  ;;  %v1695_v29 = vld [vmem:[#allocation3 + $0x24] sm:$0xf0] }
  0x20   :  { %492 = vmatpush.bf16.msra.mxu0 %v1727_v4  ;;  %v1385_v27 = vor.u32 %v1692_v24, %v1382_v25  ;;  %v1694_v30 = vld [vmem:[#allocation3 + $0x24] sm:$0xf]  ;;  %v1390_v31 = vld [vmem:[#allocation3 + $0x28] sm:$0xf0]  ;;  %v1389_v32 = vor.u32 %v1695_v29, %v1388_v28  ;;  %v1396_v34 = vld [vmem:[#allocation3 + $0x30] sm:$0xf] }
  0x21   :  { %581 = vmatpush.bf16.msra.mxu1 %v1735_v5  ;;  %v1393_v33 = vor.u32 %v1694_v30, %v1390_v31  ;;  %v1697_v35 = vld [vmem:[#allocation3 + $0x34] sm:$0xf0]  ;;  %v1696_v36 = vld [vmem:[#allocation3 + $0x34] sm:$0xf]  ;;  %v1398_v37 = vld [vmem:[#allocation3 + $0x38] sm:$0xf0] }
  0x22   :  { %v1397_v38 = vor.u32 %v1697_v35, %v1396_v34  ;;  %v1401_v39 = vor.u32 %v1696_v36, %v1398_v37  ;;  %v1404_v40 = vld [vmem:[#allocation3 + $0x40] sm:$0xf]  ;;  %v1699_v41 = vld [vmem:[#allocation3 + $0x44] sm:$0xf0]  ;;  %v1698_v42 = vld [vmem:[#allocation3 + $0x44] sm:$0xf] }
  0x23   :  { %v1406_v43 = vld [vmem:[#allocation3 + $0x48] sm:$0xf0]  ;;  %v1405_v44 = vor.u32 %v1699_v41, %v1404_v40  ;;  %v1769_v46 = vld [vmem:[#allocation11 + $0x38] sm:$0xff]  ;;  %v1768_v48 = vld [vmem:[#allocation11 + $0x30] sm:$0xff] }
  0x24   :  { %493 = vmatpush.bf16.msra.mxu0 %v1726_v6  ;;  %v1409_v45 = vor.u32 %v1698_v42, %v1406_v43  ;;  %v1745_v47 = vld [vmem:[#allocation9 + $0x38] sm:$0xff]  ;;  %991 = vmatpush.bf16.msra.mxu2 %v1769_v46  ;;  %v1744_v49 = vld [vmem:[#allocation9 + $0x30] sm:$0xff]  ;;  %v1767_v50 = vld [vmem:[#allocation11 + $0x28] sm:$0xff] }
  0x25   :  { %582 = vmatpush.bf16.msra.mxu1 %v1734_v7  ;;  %1128 = vmatpush.bf16.msra.mxu3 %v1745_v47  ;;  %v1412_v51 = vld [vmem:[#allocation3 + $0x50] sm:$0xf]  ;;  %v1701_v52 = vld [vmem:[#allocation3 + $0x54] sm:$0xf0]  ;;  %v1700_v53 = vld [vmem:[#allocation3 + $0x54] sm:$0xf] }
  0x26   :  { %v1414_v54 = vld [vmem:[#allocation3 + $0x58] sm:$0xf0]  ;;  %v1766_v55 = vld [vmem:[#allocation11 + $0x20] sm:$0xff]  ;;  %v1413_v56 = vor.u32 %v1701_v52, %v1412_v51  ;;  %v1743_v59 = vld [vmem:[#allocation9 + $0x28] sm:$0xff] }
  0x27   :  { %v1417_v57 = vor.u32 %v1700_v53, %v1414_v54  ;;  %v1765_v58 = vld [vmem:[#allocation11 + $0x18] sm:$0xff]  ;;  %v1764_v60 = vld [vmem:[#allocation11 + $0x10] sm:$0xff]  ;;  %v1742_v61 = vld [vmem:[#allocation9 + $0x20] sm:$0xff] }
  0x28   :  { %494 = vmatpush.bf16.msra.mxu0 %v1725_v8  ;;  %992 = vmatpush.bf16.msra.mxu2 %v1768_v48  ;;  %v1763_v62 = vld [vmem:[#allocation11 + $0x8] sm:$0xff]  ;;  %v1741_v63 = vld [vmem:[#allocation9 + $0x18] sm:$0xff]  ;;  %v1420_v0 = vld [vmem:[#allocation3 + $0x60] sm:$0xf] }
  0x29   :  { %583 = vmatpush.bf16.msra.mxu1 %v1733_v9  ;;  %1129 = vmatpush.bf16.msra.mxu3 %v1744_v49  ;;  %v1703_v1 = vld [vmem:[#allocation3 + $0x64] sm:$0xf0]  ;;  %v1702_v2 = vld [vmem:[#allocation3 + $0x64] sm:$0xf]  ;;  %v1422_v3 = vld [vmem:[#allocation3 + $0x68] sm:$0xf0] }
  0x2a   :  { %v1421_v4 = vor.u32 %v1703_v1, %v1420_v0  ;;  %v1425_v5 = vor.u32 %v1702_v2, %v1422_v3  ;;  %v1762_v6 = vld [vmem:[#allocation11] sm:$0xff]  ;;  %v1740_v7 = vld [vmem:[#allocation9 + $0x10] sm:$0xff]  ;;  %v1739_v9 = vld [vmem:[#allocation9 + $0x8] sm:$0xff] }
  0x2b   :  { %v1746_v8 = vld [vmem:[#allocation8] sm:$0xff]  ;;  %v1747_v17 = vld [vmem:[#allocation8 + $0x8] sm:$0xff]  ;;  %v1708_v34 = vld [vmem:[#allocation3 + $0x94] sm:$0xf] }
  0x2c   :  { %495 = vmatpush.bf16.msra.mxu0 %v1724_v10  ;;  %993 = vmatpush.bf16.msra.mxu2 %v1767_v50  ;;  %v1738_v10 = vld [vmem:[#allocation9] sm:$0xff]  ;;  %v1707_v19 = vld [vmem:[#allocation3 + $0x84] sm:$0xf0]  ;;  %v1446_v35 = vld [vmem:[#allocation3 + $0x98] sm:$0xf0] }
  0x2d   :  { %584 = vmatpush.bf16.msra.mxu1 %v1732_v11  ;;  %1130 = vmatpush.bf16.msra.mxu3 %v1743_v59  ;;  %v1428_v11 = vld [vmem:[#allocation3 + $0x70] sm:$0xf]  ;;  %v1436_v18 = vld [vmem:[#allocation3 + $0x80] sm:$0xf]  ;;  %v1449_v37 = vor.u32 %v1708_v34, %v1446_v35  ;;  %v1749_v40 = vld [vmem:[#allocation8 + $0x18] sm:$0xff] }
  0x2e   :  { %v1437_v22 = vor.u32 %v1707_v19, %v1436_v18  ;;  %v1452_v46 = vld [vmem:[#allocation3 + $0xa0] sm:$0xf]  ;;  %v1711_v47 = vld [vmem:[#allocation3 + $0xa4] sm:$0xf0]  ;;  %v1710_v48 = vld [vmem:[#allocation3 + $0xa4] sm:$0xf] }
  0x2f   :  { %v1454_v49 = vld [vmem:[#allocation3 + $0xa8] sm:$0xf0]  ;;  %v1453_v50 = vor.u32 %v1711_v47, %v1452_v46  ;;  %v1750_v54 = vld [vmem:[#allocation8 + $0x20] sm:$0xff]  ;;  %v1752_v18 = vld [vmem:[#allocation8 + $0x30] sm:$0xff] }
  0x30   :  { %496 = vmatpush.bf16.msra.mxu0 %v1723_v12  ;;  %994 = vmatpush.bf16.msra.mxu2 %v1766_v55  ;;  %v1705_v12 = vld [vmem:[#allocation3 + $0x74] sm:$0xf0]  ;;  %v1457_v51 = vor.u32 %v1710_v48, %v1454_v49  ;;  %v1754_v46 = vld [vmem:[#allocation8 + $0x40] sm:$0xff] }
  0x31   :  { %585 = vmatpush.bf16.msra.mxu1 %v1731_v13  ;;  %1131 = vmatpush.bf16.msra.mxu3 %v1742_v61  ;;  %v1704_v13 = vld [vmem:[#allocation3 + $0x74] sm:$0xf]  ;;  %v1713_v61 = vld [vmem:[#allocation3 + $0xb4] sm:$0xf0] }
  0x34   :  { %497 = vmatpush.bf16.msra.mxu0 %v1722_v14  ;;  %995 = vmatpush.bf16.msra.mxu2 %v1765_v58  ;;  %v1430_v14 = vld [vmem:[#allocation3 + $0x78] sm:$0xf0] }
  0x35   :  { %586 = vmatpush.bf16.msra.mxu1 %v1730_v15  ;;  %1132 = vmatpush.bf16.msra.mxu3 %v1741_v63  ;;  %v1429_v15 = vor.u32 %v1705_v12, %v1428_v11  ;;  %v1433_v16 = vor.u32 %v1704_v13, %v1430_v14  ;;  %v1462_v63 = vld [vmem:[#allocation3 + $0xb8] sm:$0xf0]  ;;  %v1715_v11 = vld [vmem:[#allocation3 + $0xc4] sm:$0xf0]  ;;  %v1714_v12 = vld [vmem:[#allocation3 + $0xc4] sm:$0xf] }
  0x36   :  { %v1470_v13 = vld [vmem:[#allocation3 + $0xc8] sm:$0xf0] }
  0x37   :  { %498 = vmatmul.bf16.vlgmr.msra.gmra.mxu0 %v1373_v20  ;;  %v1706_v20 = vld [vmem:[#allocation3 + $0x84] sm:$0xf] }
  0x38   :  { %587 = vmatmul.bf16.vlgmr.msra.gmra.mxu1 %v1377_v21  ;;  %996 = vmatpush.bf16.msra.mxu2 %v1764_v60  ;;  %v1438_v21 = vld [vmem:[#allocation3 + $0x88] sm:$0xf0]  ;;  %v1460_v60 = vld [vmem:[#allocation3 + $0xb0] sm:$0xf] }
  0x39   :  { %1133 = vmatpush.bf16.msra.mxu3 %v1740_v7  ;;  %v1441_v23 = vor.u32 %v1706_v20, %v1438_v21  ;;  %v1461_v0 = vor.u32 %v1713_v61, %v1460_v60 }
  0x3c   :  { %997 = vmatpush.bf16.msra.mxu2 %v1763_v62  ;;  %v1712_v62 = vld [vmem:[#allocation3 + $0xb4] sm:$0xf] }
  0x3d   :  { %1134 = vmatpush.bf16.msra.mxu3 %v1739_v9  ;;  %v1465_v1 = vor.u32 %v1712_v62, %v1462_v63  ;;  %v1755_v62 = vld [vmem:[#allocation8 + $0x48] sm:$0xff] }
  0x40   :  { %998 = vmatpush.bf16.msra.mxu2 %v1762_v6 }
  0x41   :  { %1135 = vmatpush.bf16.msra.mxu3 %v1738_v10  ;;  %v1468_v10 = vld [vmem:[#allocation3 + $0xc0] sm:$0xf] }
  0x42   :  { %v1469_v14 = vor.u32 %v1715_v11, %v1468_v10 }
  0x43   :  { %999 = vmatmul.bf16.vlgmr.msra.gmra.mxu2 %v1746_v8 }
  0x47   :  { %503 = vmatmul.bf16.gmra.mxu0 %v1381_v26  ;;  %v1748_v26 = vld [vmem:[#allocation8 + $0x10] sm:$0xff] }
  0x48   :  { %592 = vmatmul.bf16.gmra.mxu1 %v1385_v27 }
  0x53   :  { %1004 = vmatmul.bf16.gmra.mxu2 %v1747_v17 }
  0x57   :  { %508 = vmatmul.bf16.gmra.mxu0 %v1389_v32  ;;  %v1444_v32 = vld [vmem:[#allocation3 + $0x90] sm:$0xf] }
  0x58   :  { %597 = vmatmul.bf16.gmra.mxu1 %v1393_v33  ;;  %v1709_v33 = vld [vmem:[#allocation3 + $0x94] sm:$0xf0] }
  0x59   :  { %v1445_v36 = vor.u32 %v1709_v33, %v1444_v32  ;;  %v1753_v32 = vld [vmem:[#allocation8 + $0x38] sm:$0xff] }
  0x63   :  { %1009 = vmatmul.bf16.gmra.mxu2 %v1748_v26  ;;  %v1716_v26 = vld [vmem:[#allocation3 + $0xd4] sm:$0xf] }
  0x67   :  { %513 = vmatmul.bf16.gmra.mxu0 %v1397_v38 }
  0x68   :  { %602 = vmatmul.bf16.gmra.mxu1 %v1401_v39 }
  0x73   :  { %1014 = vmatmul.bf16.gmra.mxu2 %v1749_v40  ;;  %v1718_v40 = vld [vmem:[#allocation3 + $0xe4] sm:$0xf] }
  0x77   :  { %518 = vmatmul.bf16.gmra.mxu0 %v1405_v44 }
  0x78   :  { %607 = vmatmul.bf16.gmra.mxu1 %v1409_v45 }
  0x83   :  { %1019 = vmatmul.bf16.gmra.mxu2 %v1750_v54  ;;  %v1721_v54 = vld [vmem:[#allocation3 + $0xf4] sm:$0xf0] }
  0x87   :  { %523 = vmatmul.bf16.gmra.mxu0 %v1413_v56 }
  0x88   :  { %612 = vmatmul.bf16.gmra.mxu1 %v1417_v57 }
  0x97   :  { %528 = vmatmul.bf16.gmra.mxu0 %v1421_v4  ;;  %v1751_v4 = vld [vmem:[#allocation8 + $0x28] sm:$0xff] }
  0x98   :  { %617 = vmatmul.bf16.gmra.mxu1 %v1425_v5  ;;  %1024 = vmatmul.bf16.gmra.mxu2 %v1751_v4 }
  0xa7   :  { %533 = vmatmul.bf16.gmra.mxu0 %v1429_v15  ;;  %v1473_v15 = vor.u32 %v1714_v12, %v1470_v13 }
  0xa8   :  { %622 = vmatmul.bf16.gmra.mxu1 %v1433_v16  ;;  %1029 = vmatmul.bf16.gmra.mxu2 %v1752_v18 }
  0xb4   :  { %v499_v24 = vpop.f32.mrf.mxu0 }
  0xb5   :  { %v588_v25 = vpop.f32.mrf.mxu1 }
  0xb6   :  { %v589_v29 = vadd.f32 %v588_v25, %v499_v24  ;;  %v1476_v24 = vld [vmem:[#allocation3 + $0xd0] sm:$0xf]  ;;  %v1717_v25 = vld [vmem:[#allocation3 + $0xd4] sm:$0xf0] }
  0xb7   :  { %538 = vmatmul.bf16.gmra.mxu0 %v1437_v22 }
  0xb8   :  { %627 = vmatmul.bf16.gmra.mxu1 %v1441_v23  ;;  %1034 = vmatmul.bf16.gmra.mxu2 %v1753_v32 }
  0xbc   :  { %v501_v27 = vpop.f32.mrf.mxu0 }
  0xbd   :  { %v590_v28 = vpop.f32.mrf.mxu1 }
  0xbe   :  { %v591_v30 = vadd.f32 %v590_v28, %v501_v27  ;;  %v1478_v27 = vld [vmem:[#allocation3 + $0xd8] sm:$0xf0]  ;;  %v1477_v28 = vor.u32 %v1717_v25, %v1476_v24 }
  0xc0   :  { %v767_v31 = vpack.c.bf16 %v591_v30, %v589_v29  ;;  %v1481_v29 = vor.u32 %v1716_v26, %v1478_v27 }
  0xc2   :  { %1136 = vmatmul.bf16.vlgmr.msra.gmra.mxu3 %v767_v31 }
  0xc4   :  { %v504_v38 = vpop.f32.mrf.mxu0 }
  0xc5   :  { %v593_v39 = vpop.f32.mrf.mxu1 }
  0xc6   :  { %v594_v43 = vadd.f32 %v593_v39, %v504_v38  ;;  %v1484_v38 = vld [vmem:[#allocation3 + $0xe0] sm:$0xf]  ;;  %v1719_v39 = vld [vmem:[#allocation3 + $0xe4] sm:$0xf0] }
  0xc7   :  { %543 = vmatmul.bf16.gmra.mxu0 %v1445_v36 }
  0xc8   :  { %632 = vmatmul.bf16.gmra.mxu1 %v1449_v37  ;;  %1039 = vmatmul.bf16.gmra.mxu2 %v1754_v46 }
  0xcc   :  { %v506_v41 = vpop.f32.mrf.mxu0 }
  0xcd   :  { %v595_v42 = vpop.f32.mrf.mxu1 }
  0xce   :  { %v596_v44 = vadd.f32 %v595_v42, %v506_v41  ;;  %v1486_v41 = vld [vmem:[#allocation3 + $0xe8] sm:$0xf0]  ;;  %v1485_v42 = vor.u32 %v1719_v39, %v1484_v38  ;;  %v1758_v39 = vld [vmem:[#allocation8 + $0x60] sm:$0xff] }
  0xd0   :  { %v768_v45 = vpack.c.bf16 %v596_v44, %v594_v43  ;;  %v1489_v43 = vor.u32 %v1718_v40, %v1486_v41 }
  0xd2   :  { %1141 = vmatmul.bf16.gmra.mxu3 %v768_v45 }
  0xd4   :  { %v509_v52 = vpop.f32.mrf.mxu0 }
  0xd5   :  { %v598_v53 = vpop.f32.mrf.mxu1 }
  0xd6   :  { %v599_v57 = vadd.f32 %v598_v53, %v509_v52  ;;  %v1492_v53 = vld [vmem:[#allocation3 + $0xf0] sm:$0xf] }
  0xd7   :  { %548 = vmatmul.bf16.gmra.mxu0 %v1453_v50 }
  0xd8   :  { %637 = vmatmul.bf16.gmra.mxu1 %v1457_v51  ;;  %v1000_v51 = vpop.f32.mrf.mxu2  ;;  %1044 = vmatmul.bf16.gmra.mxu2 %v1755_v62 }
  0xdc   :  { %v511_v55 = vpop.f32.mrf.mxu0 }
  0xdd   :  { %v600_v56 = vpop.f32.mrf.mxu1 }
  0xde   :  { %v601_v58 = vadd.f32 %v600_v56, %v511_v55  ;;  %v1720_v55 = vld [vmem:[#allocation3 + $0xf4] sm:$0xf]  ;;  %v1494_v56 = vld [vmem:[#allocation3 + $0xf8] sm:$0xf0] }
  0xe0   :  { %v769_v59 = vpack.c.bf16 %v601_v58, %v599_v57  ;;  %v1493_v57 = vor.u32 %v1721_v54, %v1492_v53  ;;  %v1497_v58 = vor.u32 %v1720_v55, %v1494_v56  ;;  %v1002_v61 = vpop.f32.mrf.mxu2 }
  0xe2   :  { %1146 = vmatmul.bf16.gmra.mxu3 %v769_v59 }
  0xe4   :  { %v514_v2 = vpop.f32.mrf.mxu0 }
  0xe5   :  { %v603_v3 = vpop.f32.mrf.mxu1 }
  0xe6   :  { %v604_v7 = vadd.f32 %v603_v3, %v514_v2 }
  0xe7   :  { %553 = vmatmul.bf16.gmra.mxu0 %v1461_v0 }
  0xe8   :  { %642 = vmatmul.bf16.gmra.mxu1 %v1465_v1  ;;  %v1005_v3 = vpop.f32.mrf.mxu2 }
  0xec   :  { %v516_v5 = vpop.f32.mrf.mxu0 }
  0xed   :  { %v605_v6 = vpop.f32.mrf.mxu1 }
  0xee   :  { %v606_v8 = vadd.f32 %v605_v6, %v516_v5 }
  0xf0   :  { %v770_v9 = vpack.c.bf16 %v606_v8, %v604_v7  ;;  %v1007_v7 = vpop.f32.mrf.mxu2  ;;  %v1756_v8 = vld [vmem:[#allocation8 + $0x50] sm:$0xff] }
  0xf1   :  { %1049 = vmatmul.bf16.gmra.mxu2 %v1756_v8 }
  0xf2   :  { %1151 = vmatmul.bf16.gmra.mxu3 %v770_v9 }
  0xf4   :  { %v519_v16 = vpop.f32.mrf.mxu0 }
  0xf5   :  { %v608_v17 = vpop.f32.mrf.mxu1 }
  0xf6   :  { %v609_v21 = vadd.f32 %v608_v17, %v519_v16 }
  0xf7   :  { %558 = vmatmul.bf16.gmra.mxu0 %v1469_v14 }
  0xf8   :  { %647 = vmatmul.bf16.gmra.mxu1 %v1473_v15  ;;  %v1010_v13 = vpop.f32.mrf.mxu2 }
  0xfc   :  { %v521_v19 = vpop.f32.mrf.mxu0 }
  0xfd   :  { %v610_v20 = vpop.f32.mrf.mxu1 }
  0xfe   :  { %v611_v22 = vadd.f32 %v610_v20, %v521_v19  ;;  %v1757_v19 = vld [vmem:[#allocation8 + $0x58] sm:$0xff] }
 0x100   :  { %v771_v23 = vpack.c.bf16 %v611_v22, %v609_v21  ;;  %v1012_v18 = vpop.f32.mrf.mxu2  ;;  %v2103_v21 = vld [vmem:[%s2148_s5] ss:$0 sm:$0xff]  ;;  %s2037_s5 = smov [#allocation12]  }
 0x101   :  { %1054 = vmatmul.bf16.gmra.mxu2 %v1757_v19  ;;  %s1353_s23 = sshll.u32 %s2037_s5, 4  ;;  %s1354_s23 = int_to_ptr.vmem [resolvable:$true] %s1353_s23 }
 0x102   :  { %1156 = vmatmul.bf16.gmra.mxu3 %v771_v23 }
 0x104   :  { %v524_v30 = vpop.f32.mrf.mxu0 }
 0x105   :  { %v613_v31 = vpop.f32.mrf.mxu1 }
 0x106   :  { %v614_v35 = vadd.f32 %v613_v31, %v524_v30 }
 0x107   :  { %563 = vmatmul.bf16.gmra.mxu0 %v1477_v28 }
 0x108   :  { %652 = vmatmul.bf16.gmra.mxu1 %v1481_v29  ;;  %v1015_v27 = vpop.f32.mrf.mxu2 }
 0x10c   :  { %v526_v33 = vpop.f32.mrf.mxu0 }
 0x10d   :  { %v615_v34 = vpop.f32.mrf.mxu1 }
 0x10e   :  { %v616_v36 = vadd.f32 %v615_v34, %v526_v33 }
 0x110   :  { %v772_v37 = vpack.c.bf16 %v616_v36, %v614_v35  ;;  %v1017_v38 = vpop.f32.mrf.mxu2 }
 0x111   :  { %1059 = vmatmul.bf16.gmra.mxu2 %v1758_v39 }
 0x112   :  { %1161 = vmatmul.bf16.gmra.mxu3 %v772_v37 }
 0x114   :  { %v529_v44 = vpop.f32.mrf.mxu0 }
 0x115   :  { %v618_v45 = vpop.f32.mrf.mxu1 }
 0x116   :  { %v619_v49 = vadd.f32 %v618_v45, %v529_v44 }
 0x117   :  { %568 = vmatmul.bf16.gmra.mxu0 %v1485_v42 }
 0x118   :  { %657 = vmatmul.bf16.gmra.mxu1 %v1489_v43  ;;  %v1020_v46 = vpop.f32.mrf.mxu2 }
 0x11c   :  { %v531_v47 = vpop.f32.mrf.mxu0 }
 0x11d   :  { %v620_v48 = vpop.f32.mrf.mxu1 }
 0x11e   :  { %v621_v50 = vadd.f32 %v620_v48, %v531_v47 }
 0x120   :  { %v773_v52 = vpack.c.bf16 %v621_v50, %v619_v49 }
 0x122   :  { %1166 = vmatmul.bf16.gmra.mxu3 %v773_v52 }
 0x124   :  { %v534_v59 = vpop.f32.mrf.mxu0 }
 0x125   :  { %v623_v60 = vpop.f32.mrf.mxu1 }
 0x126   :  { %v624_v1 = vadd.f32 %v623_v60, %v534_v59 }
 0x127   :  { %573 = vmatmul.bf16.gmra.mxu0 %v1493_v57  ;;  %v1022_v57 = vpop.f32.mrf.mxu2 }
 0x128   :  { %662 = vmatmul.bf16.gmra.mxu1 %v1497_v58  ;;  %v1759_v58 = vld [vmem:[#allocation8 + $0x68] sm:$0xff] }
 0x129   :  { %1064 = vmatmul.bf16.gmra.mxu2 %v1759_v58 }
 0x12c   :  { %v536_v63 = vpop.f32.mrf.mxu0 }
 0x12d   :  { %v625_v0 = vpop.f32.mrf.mxu1 }
 0x12e   :  { %v626_v2 = vadd.f32 %v625_v0, %v536_v63 }
 0x130   :  { %v774_v4 = vpack.c.bf16 %v626_v2, %v624_v1  ;;  %v1025_v1 = vpop.f32.mrf.mxu2 }
 0x132   :  { %1171 = vmatmul.bf16.gmra.mxu3 %v774_v4 }
 0x134   :  { %v539_v5 = vpop.f32.mrf.mxu0 }
 0x135   :  { %v628_v6 = vpop.f32.mrf.mxu1 }
 0x136   :  { %v629_v11 = vadd.f32 %v628_v6, %v539_v5 }
 0x13c   :  { %v541_v9 = vpop.f32.mrf.mxu0 }
 0x13d   :  { %v630_v10 = vpop.f32.mrf.mxu1 }
 0x13e   :  { %v631_v12 = vadd.f32 %v630_v10, %v541_v9 }
 0x140   :  { %v775_v14 = vpack.c.bf16 %v631_v12, %v629_v11  ;;  %v1027_v12 = vpop.f32.mrf.mxu2 }
 0x142   :  { %1176 = vmatmul.bf16.gmra.mxu3 %v775_v14 }
 0x144   :  { %v544_v15 = vpop.f32.mrf.mxu0 }
 0x145   :  { %v633_v16 = vpop.f32.mrf.mxu1  ;;  %v1137_v17 = vpop.f32.mrf.mxu3 }
 0x146   :  { %v1138_v20 = vadd.f32 %v1137_v17, %v1000_v51  ;;  %v634_v24 = vadd.f32 %v633_v16, %v544_v15 }
 0x148   :  { %v1221_v28 = vadd.f32 %v2103_v21, %v1138_v20 }
 0x14a   :  { %v1253_v32 = vmax.f32 %v1221_v28, 0.0 }
 0x14c   :  { %v546_v22 = vpop.f32.mrf.mxu0 }
 0x14d   :  { %v635_v23 = vpop.f32.mrf.mxu1  ;;  %v1139_v26 = vpop.f32.mrf.mxu3 }
 0x14e   :  { %v636_v25 = vadd.f32 %v635_v23, %v546_v22  ;;  %v1140_v29 = vadd.f32 %v1139_v26, %v1002_v61 }
 0x150   :  { %v776_v30 = vpack.c.bf16 %v636_v25, %v634_v24  ;;  %v1222_v31 = vadd.f32 %v2103_v21, %v1140_v29  ;;  %v1030_v24 = vpop.f32.mrf.mxu2 }
 0x152   :  { %1181 = vmatmul.bf16.gmra.mxu3 %v776_v30  ;;  %v1254_v33 = vmax.f32 %v1222_v31, 0.0 }
 0x154   :  { %v1773_v34 = vpack.c.bf16 %v1254_v33, %v1253_v32  ;;  %v549_v35 = vpop.f32.mrf.mxu0  ;;  %v1761_v32 = vld [vmem:[#allocation8 + $0x78] sm:$0xff] }
 0x155   :  { %v638_v36 = vpop.f32.mrf.mxu1  ;;  %v1142_v37 = vpop.f32.mrf.mxu3 }
 0x156   :  { %1774 = vst [vmem:[#allocation12] sm:$0xff] %v1773_v34   ;;  %v1143_v40 = vadd.f32 %v1142_v37, %v1005_v3  ;;  %v639_v43 = vadd.f32 %v638_v36, %v549_v35 }
 0x158   :  { %v1223_v47 = vadd.f32 %v2103_v21, %v1143_v40  ;;  %v1032_v33 = vpop.f32.mrf.mxu2 }
 0x15a   :  { %v1255_v51 = vmax.f32 %v1223_v47, 0.0 }
 0x15c   :  { %v551_v41 = vpop.f32.mrf.mxu0 }
 0x15d   :  { %v640_v42 = vpop.f32.mrf.mxu1  ;;  %v1144_v45 = vpop.f32.mrf.mxu3 }
 0x15e   :  { %v641_v44 = vadd.f32 %v640_v42, %v551_v41  ;;  %v1145_v48 = vadd.f32 %v1144_v45, %v1007_v7 }
 0x160   :  { %v777_v49 = vpack.c.bf16 %v641_v44, %v639_v43  ;;  %v1224_v50 = vadd.f32 %v2103_v21, %v1145_v48  ;;  %v1035_v47 = vpop.f32.mrf.mxu2 }
 0x162   :  { %1186 = vmatmul.bf16.gmra.mxu3 %v777_v49  ;;  %v1256_v52 = vmax.f32 %v1224_v50, 0.0 }
 0x164   :  { %v1778_v53 = vpack.c.bf16 %v1256_v52, %v1255_v51  ;;  %v554_v54 = vpop.f32.mrf.mxu0 }
 0x165   :  { %v643_v55 = vpop.f32.mrf.mxu1  ;;  %v1147_v56 = vpop.f32.mrf.mxu3 }
 0x166   :  { %1850 = vst [vmem:[#allocation12 + $0x8] sm:$0xff] %v1778_v53   ;;  %v1148_v59 = vadd.f32 %v1147_v56, %v1010_v13  ;;  %v644_v62 = vadd.f32 %v643_v55, %v554_v54  ;;  %v1760_v13 = vld [vmem:[#allocation8 + $0x70] sm:$0xff] }
 0x167   :  { %1069 = vmatmul.bf16.gmra.mxu2 %v1760_v13 }
 0x168   :  { %v1225_v2 = vadd.f32 %v2103_v21, %v1148_v59  ;;  %v1037_v58 = vpop.f32.mrf.mxu2 }
 0x16a   :  { %v1257_v6 = vmax.f32 %v1225_v2, 0.0 }
 0x16c   :  { %v556_v60 = vpop.f32.mrf.mxu0 }
 0x16d   :  { %v645_v61 = vpop.f32.mrf.mxu1  ;;  %v1149_v0 = vpop.f32.mrf.mxu3 }
 0x16e   :  { %v646_v63 = vadd.f32 %v645_v61, %v556_v60  ;;  %v1150_v3 = vadd.f32 %v1149_v0, %v1012_v18 }
 0x170   :  { %v778_v4 = vpack.c.bf16 %v646_v63, %v644_v62  ;;  %v1226_v5 = vadd.f32 %v2103_v21, %v1150_v3 }
 0x172   :  { %1191 = vmatmul.bf16.gmra.mxu3 %v778_v4  ;;  %v1258_v7 = vmax.f32 %v1226_v5, 0.0 }
 0x174   :  { %v1783_v8 = vpack.c.bf16 %v1258_v7, %v1257_v6  ;;  %v559_v9 = vpop.f32.mrf.mxu0 }
 0x175   :  { %v648_v10 = vpop.f32.mrf.mxu1  ;;  %v1152_v11 = vpop.f32.mrf.mxu3 }
 0x176   :  { %1851 = vst [vmem:[#allocation12 + $0x10] sm:$0xff] %v1783_v8   ;;  %v1153_v14 = vadd.f32 %v1152_v11, %v1015_v27  ;;  %v649_v17 = vadd.f32 %v648_v10, %v559_v9 }
 0x177   :  { %1074 = vmatmul.bf16.gmra.mxu2 %v1761_v32 }
 0x178   :  { %v1227_v20 = vadd.f32 %v2103_v21, %v1153_v14 }
 0x17a   :  { %v1259_v26 = vmax.f32 %v1227_v20, 0.0 }
 0x17c   :  { %v561_v15 = vpop.f32.mrf.mxu0 }
 0x17d   :  { %v650_v16 = vpop.f32.mrf.mxu1  ;;  %v1154_v18 = vpop.f32.mrf.mxu3 }
 0x17e   :  { %v651_v19 = vadd.f32 %v650_v16, %v561_v15  ;;  %v1155_v22 = vadd.f32 %v1154_v18, %v1017_v38 }
 0x180   :  { %v779_v23 = vpack.c.bf16 %v651_v19, %v649_v17  ;;  %v1228_v25 = vadd.f32 %v2103_v21, %v1155_v22 }
 0x182   :  { %1196 = vmatmul.bf16.gmra.mxu3 %v779_v23  ;;  %v1260_v28 = vmax.f32 %v1228_v25, 0.0 }
 0x184   :  { %v1788_v29 = vpack.c.bf16 %v1260_v28, %v1259_v26  ;;  %v564_v30 = vpop.f32.mrf.mxu0 }
 0x185   :  { %v653_v31 = vpop.f32.mrf.mxu1  ;;  %v1157_v27 = vpop.f32.mrf.mxu3 }
 0x186   :  { %1852 = vst [vmem:[#allocation12 + $0x18] sm:$0xff] %v1788_v29   ;;  %v1158_v34 = vadd.f32 %v1157_v27, %v1020_v46  ;;  %v654_v37 = vadd.f32 %v653_v31, %v564_v30 }
 0x188   :  { %v1229_v40 = vadd.f32 %v2103_v21, %v1158_v34 }
 0x18a   :  { %v1261_v44 = vmax.f32 %v1229_v40, 0.0 }
 0x18c   :  { %v566_v35 = vpop.f32.mrf.mxu0 }
 0x18d   :  { %v655_v36 = vpop.f32.mrf.mxu1  ;;  %v1159_v39 = vpop.f32.mrf.mxu3 }
 0x18e   :  { %v656_v38 = vadd.f32 %v655_v36, %v566_v35  ;;  %v1160_v41 = vadd.f32 %v1159_v39, %v1022_v57 }
 0x190   :  { %v780_v42 = vpack.c.bf16 %v656_v38, %v654_v37  ;;  %v1230_v43 = vadd.f32 %v2103_v21, %v1160_v41 }
 0x192   :  { %1201 = vmatmul.bf16.gmra.mxu3 %v780_v42  ;;  %v1262_v45 = vmax.f32 %v1230_v43, 0.0 }
 0x194   :  { %v1793_v48 = vpack.c.bf16 %v1262_v45, %v1261_v44  ;;  %v569_v49 = vpop.f32.mrf.mxu0 }
 0x195   :  { %v658_v50 = vpop.f32.mrf.mxu1  ;;  %v1162_v46 = vpop.f32.mrf.mxu3 }
 0x196   :  { %1853 = vst [vmem:[#allocation12 + $0x20] sm:$0xff] %v1793_v48   ;;  %v1163_v51 = vadd.f32 %v1162_v46, %v1025_v1  ;;  %v659_v54 = vadd.f32 %v658_v50, %v569_v49  ;;  %v1040_v1 = vpop.f32.mrf.mxu2 }
 0x198   :  { %v1231_v57 = vadd.f32 %v2103_v21, %v1163_v51 }
 0x19a   :  { %v1263_v62 = vmax.f32 %v1231_v57, 0.0 }
 0x19c   :  { %v571_v52 = vpop.f32.mrf.mxu0 }
 0x19d   :  { %v660_v53 = vpop.f32.mrf.mxu1  ;;  %v1164_v56 = vpop.f32.mrf.mxu3 }
 0x19e   :  { %v661_v55 = vadd.f32 %v660_v53, %v571_v52  ;;  %v1165_v59 = vadd.f32 %v1164_v56, %v1027_v12  ;;  %v1042_v15 = vpop.f32.mrf.mxu2 }
 0x1a0   :  { %v781_v60 = vpack.c.bf16 %v661_v55, %v659_v54  ;;  %v1232_v61 = vadd.f32 %v2103_v21, %v1165_v59 }
 0x1a2   :  { %1206 = vmatmul.bf16.gmra.mxu3 %v781_v60  ;;  %v1264_v63 = vmax.f32 %v1232_v61, 0.0 }
 0x1a4   :  { %v1798_v0 = vpack.c.bf16 %v1264_v63, %v1263_v62  ;;  %v574_v2 = vpop.f32.mrf.mxu0 }
 0x1a5   :  { %v663_v3 = vpop.f32.mrf.mxu1  ;;  %v1167_v4 = vpop.f32.mrf.mxu3 }
 0x1a6   :  { %1854 = vst [vmem:[#allocation12 + $0x28] sm:$0xff] %v1798_v0   ;;  %v1168_v5 = vadd.f32 %v1167_v4, %v1030_v24  ;;  %v664_v8 = vadd.f32 %v663_v3, %v574_v2  ;;  %v1045_v22 = vpop.f32.mrf.mxu2 }
 0x1a8   :  { %v1233_v11 = vadd.f32 %v2103_v21, %v1168_v5 }
 0x1aa   :  { %v1265_v16 = vmax.f32 %v1233_v11, 0.0 }
 0x1ac   :  { %v576_v6 = vpop.f32.mrf.mxu0 }
 0x1ad   :  { %v665_v7 = vpop.f32.mrf.mxu1  ;;  %v1169_v10 = vpop.f32.mrf.mxu3 }
 0x1ae   :  { %v666_v9 = vadd.f32 %v665_v7, %v576_v6  ;;  %v1170_v12 = vadd.f32 %v1169_v10, %v1032_v33  ;;  %v1047_v27 = vpop.f32.mrf.mxu2 }
 0x1b0   :  { %v782_v13 = vpack.c.bf16 %v666_v9, %v664_v8  ;;  %v1234_v14 = vadd.f32 %v2103_v21, %v1170_v12 }
 0x1b2   :  { %1211 = vmatmul.bf16.gmra.mxu3 %v782_v13  ;;  %v1266_v17 = vmax.f32 %v1234_v14, 0.0 }
 0x1b4   :  { %v1803_v19 = vpack.c.bf16 %v1266_v17, %v1265_v16 }
 0x1b5   :  { %v1172_v18 = vpop.f32.mrf.mxu3 }
 0x1b6   :  { %1855 = vst [vmem:[#allocation12 + $0x30] sm:$0xff] %v1803_v19   ;;  %v1173_v20 = vadd.f32 %v1172_v18, %v1035_v47  ;;  %v1050_v36 = vpop.f32.mrf.mxu2 }
 0x1b8   :  { %v1235_v24 = vadd.f32 %v2103_v21, %v1173_v20 }
 0x1ba   :  { %v1267_v28 = vmax.f32 %v1235_v24, 0.0 }
 0x1bd   :  { %v1174_v23 = vpop.f32.mrf.mxu3 }
 0x1be   :  { %v1175_v25 = vadd.f32 %v1174_v23, %v1037_v58  ;;  %v1052_v42 = vpop.f32.mrf.mxu2 }
 0x1c0   :  { %v1236_v26 = vadd.f32 %v2103_v21, %v1175_v25 }
 0x1c2   :  { %v1268_v29 = vmax.f32 %v1236_v26, 0.0 }
 0x1c4   :  { %v1808_v30 = vpack.c.bf16 %v1268_v29, %v1267_v28 }
 0x1c5   :  { %v1177_v31 = vpop.f32.mrf.mxu3 }
 0x1c6   :  { %1856 = vst [vmem:[#allocation12 + $0x38] sm:$0xff] %v1808_v30   ;;  %v1178_v32 = vadd.f32 %v1177_v31, %v1040_v1  ;;  %v1055_v46 = vpop.f32.mrf.mxu2 }
 0x1c8   :  { %v1237_v34 = vadd.f32 %v2103_v21, %v1178_v32 }
 0x1ca   :  { %v1269_v38 = vmax.f32 %v1237_v34, 0.0 }
 0x1cd   :  { %v1179_v33 = vpop.f32.mrf.mxu3 }
 0x1ce   :  { %v1180_v35 = vadd.f32 %v1179_v33, %v1042_v15  ;;  %v1057_v55 = vpop.f32.mrf.mxu2 }
 0x1d0   :  { %v1238_v37 = vadd.f32 %v2103_v21, %v1180_v35 }
 0x1d2   :  { %v1270_v39 = vmax.f32 %v1238_v37, 0.0 }
 0x1d4   :  { %v1813_v40 = vpack.c.bf16 %v1270_v39, %v1269_v38 }
 0x1d5   :  { %v1182_v41 = vpop.f32.mrf.mxu3 }
 0x1d6   :  { %1857 = vst [vmem:[#allocation12 + $0x40] sm:$0xff] %v1813_v40   ;;  %v1183_v43 = vadd.f32 %v1182_v41, %v1045_v22  ;;  %v1060_v63 = vpop.f32.mrf.mxu2 }
 0x1d8   :  { %v1239_v45 = vadd.f32 %v2103_v21, %v1183_v43 }
 0x1da   :  { %v1271_v49 = vmax.f32 %v1239_v45, 0.0 }
 0x1dd   :  { %v1184_v44 = vpop.f32.mrf.mxu3 }
 0x1de   :  { %v1185_v47 = vadd.f32 %v1184_v44, %v1047_v27  ;;  %v1062_v5 = vpop.f32.mrf.mxu2 }
 0x1e0   :  { %v1240_v48 = vadd.f32 %v2103_v21, %v1185_v47 }
 0x1e2   :  { %v1272_v50 = vmax.f32 %v1240_v48, 0.0 }
 0x1e4   :  { %v1818_v51 = vpack.c.bf16 %v1272_v50, %v1271_v49 }
 0x1e5   :  { %v1187_v52 = vpop.f32.mrf.mxu3 }
 0x1e6   :  { %1858 = vst [vmem:[#allocation12 + $0x48] sm:$0xff] %v1818_v51   ;;  %v1188_v53 = vadd.f32 %v1187_v52, %v1050_v36  ;;  %v1065_v11 = vpop.f32.mrf.mxu2 }
 0x1e8   :  { %v1241_v56 = vadd.f32 %v2103_v21, %v1188_v53 }
 0x1ea   :  { %v1273_v59 = vmax.f32 %v1241_v56, 0.0 }
 0x1ed   :  { %v1189_v54 = vpop.f32.mrf.mxu3 }
 0x1ee   :  { %v1190_v58 = vadd.f32 %v1189_v54, %v1052_v42  ;;  %v1067_v18 = vpop.f32.mrf.mxu2 }
 0x1f0   :  { %v1242_v57 = vadd.f32 %v2103_v21, %v1190_v58 }
 0x1f2   :  { %v1274_v60 = vmax.f32 %v1242_v57, 0.0 }
 0x1f4   :  { %v1823_v61 = vpack.c.bf16 %v1274_v60, %v1273_v59 }
 0x1f5   :  { %v1192_v62 = vpop.f32.mrf.mxu3 }
 0x1f6   :  { %1859 = vst [vmem:[#allocation12 + $0x50] sm:$0xff] %v1823_v61   ;;  %v1193_v0 = vadd.f32 %v1192_v62, %v1055_v46  ;;  %v1070_v26 = vpop.f32.mrf.mxu2 }
 0x1f8   :  { %v1243_v3 = vadd.f32 %v2103_v21, %v1193_v0 }
 0x1fa   :  { %v1275_v6 = vmax.f32 %v1243_v3, 0.0 }
 0x1fd   :  { %v1194_v2 = vpop.f32.mrf.mxu3 }
 0x1fe   :  { %v1195_v4 = vadd.f32 %v1194_v2, %v1057_v55  ;;  %v1072_v32 = vpop.f32.mrf.mxu2 }
 0x200   :  { %v1244_v1 = vadd.f32 %v2103_v21, %v1195_v4 }
 0x202   :  { %v1276_v7 = vmax.f32 %v1244_v1, 0.0 }
 0x204   :  { %v1828_v8 = vpack.c.bf16 %v1276_v7, %v1275_v6 }
 0x205   :  { %v1197_v9 = vpop.f32.mrf.mxu3 }
 0x206   :  { %1860 = vst [vmem:[#allocation12 + $0x58] sm:$0xff] %v1828_v8   ;;  %v1198_v10 = vadd.f32 %v1197_v9, %v1060_v63  ;;  %v1075_v40 = vpop.f32.mrf.mxu2 }
 0x208   :  { %v1245_v13 = vadd.f32 %v2103_v21, %v1198_v10 }
 0x20a   :  { %v1277_v16 = vmax.f32 %v1245_v13, 0.0 }
 0x20d   :  { %v1199_v12 = vpop.f32.mrf.mxu3 }
 0x20e   :  { %v1200_v14 = vadd.f32 %v1199_v12, %v1062_v5  ;;  %v1077_v44 = vpop.f32.mrf.mxu2 }
 0x210   :  { %v1246_v15 = vadd.f32 %v2103_v21, %v1200_v14 }
 0x212   :  { %v1278_v17 = vmax.f32 %v1246_v15, 0.0 }
 0x214   :  { %v1833_v19 = vpack.c.bf16 %v1278_v17, %v1277_v16 }
 0x215   :  { %v1202_v20 = vpop.f32.mrf.mxu3 }
 0x216   :  { %1861 = vst [vmem:[#allocation12 + $0x60] sm:$0xff] %v1833_v19   ;;  %v1203_v22 = vadd.f32 %v1202_v20, %v1065_v11 }
 0x218   :  { %v1247_v24 = vadd.f32 %v2103_v21, %v1203_v22 }
 0x21a   :  { %v1279_v29 = vmax.f32 %v1247_v24, 0.0 }
 0x21d   :  { %v1204_v23 = vpop.f32.mrf.mxu3 }
 0x21e   :  { %v1205_v25 = vadd.f32 %v1204_v23, %v1067_v18 }
 0x220   :  { %v1248_v28 = vadd.f32 %v2103_v21, %v1205_v25 }
 0x222   :  { %v1280_v30 = vmax.f32 %v1248_v28, 0.0 }
 0x224   :  { %v1838_v31 = vpack.c.bf16 %v1280_v30, %v1279_v29 }
 0x225   :  { %v1207_v27 = vpop.f32.mrf.mxu3 }
 0x226   :  { %1862 = vst [vmem:[#allocation12 + $0x68] sm:$0xff] %v1838_v31   ;;  %v1208_v33 = vadd.f32 %v1207_v27, %v1070_v26 }
 0x228   :  { %v1249_v35 = vadd.f32 %v2103_v21, %v1208_v33 }
 0x22a   :  { %v1281_v38 = vmax.f32 %v1249_v35, 0.0 }
 0x22d   :  { %v1209_v34 = vpop.f32.mrf.mxu3 }
 0x22e   :  { %v1210_v36 = vadd.f32 %v1209_v34, %v1072_v32 }
 0x230   :  { %v1250_v37 = vadd.f32 %v2103_v21, %v1210_v36 }
 0x232   :  { %v1282_v39 = vmax.f32 %v1250_v37, 0.0 }
 0x234   :  { %v1843_v41 = vpack.c.bf16 %v1282_v39, %v1281_v38 }
 0x235   :  { %v1212_v42 = vpop.f32.mrf.mxu3 }
 0x236   :  { %1863 = vst [vmem:[#allocation12 + $0x70] sm:$0xff] %v1843_v41   ;;  %v1213_v43 = vadd.f32 %v1212_v42, %v1075_v40 }
 0x238   :  { %v1251_v47 = vadd.f32 %v2103_v21, %v1213_v43 }
 0x23a   :  { %v1283_v50 = vmax.f32 %v1251_v47, 0.0 }
 0x23d   :  { %v1214_v45 = vpop.f32.mrf.mxu3 }
 0x23e   :  { %v1215_v48 = vadd.f32 %v1214_v45, %v1077_v44 }
 0x240   :  { %v1252_v49 = vadd.f32 %v2103_v21, %v1215_v48 }
 0x242   :  { %v1284_v46 = vmax.f32 %v1252_v49, 0.0 }
 0x244   :  { %v1848_v51 = vpack.c.bf16 %v1284_v46, %v1283_v50 }
 0x246   :  { %1864 = vst [vmem:[#allocation12 + $0x78] sm:$0xff] %v1848_v51  }
 0x247   :  { %1361 = dma.vmem_to_hbm [thread:$0]  %s1354_s23, 2048, %s1356_s26, [#allocation5], %s2029_s29, %s2029_s29, %s2030_s30  }
 0x248   :  { %2026 = dma.done.wait [#allocation5], 2048  }
 0x249   :  { %2027 = vsyncadd [#allocation5], 4294965248 }
 0x24a   :  { %1366 = vsyncpa [#allocation4], 1 }
 0x24b   :  { %1367 = vsyncpa [#allocation7], 1 }
 0x24c   :  { %1368 = vsyncpa [#allocation10], 1 }
 0x24d   :  { %1369 = vsyncpa [#allocation5], 1 }

</bundles_post_ra>
